<compile_context>
chip_gen: v5e
topology: v5e:2x2
jax: 0.10.0
libtpu: 0.0.40
codegen_flags: <defaults>
</compile_context>

<pallas_src>
import jax
import jax.numpy as jnp
from jax.experimental import pallas as pl
from jax.experimental.pallas import tpu as pltpu


def _leaky_relu(x, negative_slope=0.01):
    # max(x, a*x) == leaky_relu(x) for 0 < a < 1; single VPU vmax.
    return jnp.maximum(x, negative_slope * x)


def policy_kernel(x_ref, w1_ref, w2_ref, wh_ref, b_ref, probs_ref, value_ref):
    L1 = w1_ref.shape[1]
    L2 = w2_ref.shape[1]

    x = x_ref[...]                                                   # [TB, n_obs]

    # Packed bias row: [b1 | b2 | ba(2) | bv(1)]
    b1 = b_ref[:, 0:L1]
    b2 = b_ref[:, L1:L1 + L2]
    bh = b_ref[:, L1 + L2:L1 + L2 + 3]

    # lin1 + leaky_relu
    h1 = jnp.dot(x, w1_ref[...], preferred_element_type=jnp.float32) + b1
    h1 = _leaky_relu(h1)                                             # [TB, L1]

    # lin2 + leaky_relu
    h2 = jnp.dot(h1, w2_ref[...], preferred_element_type=jnp.float32) + b2
    h2 = _leaky_relu(h2)                                             # [TB, L2]

    # Fused heads: one matmul producing [action_logit0, action_logit1, value]
    heads = jnp.dot(h2, wh_ref[...], preferred_element_type=jnp.float32) + bh  # [TB, 3]

    # Exact 2-class softmax in sigmoid form (no XLU reductions).
    # Overflow of exp(-d) -> inf yields the correct limit p1 -> 0 under IEEE.
    d = heads[:, 1:2] - heads[:, 0:1]                                # logit1 - logit0
    p1 = 1.0 / (1.0 + jnp.exp(-d))
    p0 = 1.0 - p1
    probs_ref[...] = jnp.concatenate([p0, p1], axis=-1).astype(probs_ref.dtype)

    # value head = column 2 of the fused head matmul
    value_ref[...] = heads[:, 2:3].astype(value_ref.dtype)


def policy_forward(x, params, tile_b=1024):
    """x: [B, n_obs] f32. params: dict with packed 'w1','w2','w_head','bias'."""
    B, n_obs = x.shape
    w1, w2, wh, b = params["w1"], params["w2"], params["w_head"], params["bias"]
    L1, L2 = w1.shape[1], w2.shape[1]
    n_bias = b.shape[1]

    # Batch tile: big enough to amortize per-step overhead (typical rollout
    # batch fits in one step; the whole working set is a few tens of KiB of
    # VMEM even double-buffered).  TILE_B is either a multiple of 8 (tile_b)
    # or equals B, satisfying the (8,128) sublane constraint.
    TILE_B = min(tile_b, B)
    grid = (pl.cdiv(B, TILE_B),)

    # Weights/biases stay resident in VMEM across all batch tiles (index 0,0).
    in_specs = [
        pl.BlockSpec((TILE_B, n_obs), lambda i: (i, 0)),     # x tile
        pl.BlockSpec((n_obs, L1),     lambda i: (0, 0)),     # w1 (resident)
        pl.BlockSpec((L1, L2),        lambda i: (0, 0)),     # w2 (resident)
        pl.BlockSpec((L2, 3),         lambda i: (0, 0)),     # fused heads (resident)
        pl.BlockSpec((1, n_bias),     lambda i: (0, 0)),     # packed biases (resident)
    ]
    out_specs = (
        pl.BlockSpec((TILE_B, 2), lambda i: (i, 0)),
        pl.BlockSpec((TILE_B, 1), lambda i: (i, 0)),
    )
    out_shapes = (
        jax.ShapeDtypeStruct((B, 2), jnp.float32),   # action_prob
        jax.ShapeDtypeStruct((B, 1), jnp.float32),   # state_values
    )

    flops = 2 * B * (n_obs * L1 + L1 * L2 + L2 * 3)
    bytes_accessed = 4 * (B * n_obs + n_obs * L1 + L1 * L2 + L2 * 3 + n_bias + B * 3)

    return pl.pallas_call(
        policy_kernel,
        out_shape=out_shapes,
        grid=grid,
        in_specs=in_specs,
        out_specs=out_specs,
        compiler_params=pltpu.CompilerParams(
            dimension_semantics=("parallel",)),      # 2 TCs on v7x; no-op on v5e/v6e
        cost_estimate=pl.CostEstimate(
            flops=flops, transcendentals=B, bytes_accessed=bytes_accessed),
    )(x, w1, w2, wh, b)


def init_params(key, n_observations, layer1=32, layer2=16):
    """PyTorch-style uniform(-1/sqrt(fan_in), +) init, packed for the kernel."""
    ks = jax.random.split(key, 8)

    def lin(kw, kb, fan_in, fan_out):
        bound = 1.0 / jnp.sqrt(fan_in)
        w = jax.random.uniform(kw, (fan_in, fan_out), jnp.float32, -bound, bound)
        b = jax.random.uniform(kb, (1, fan_out), jnp.float32, -bound, bound)
        return w, b

    w1, b1 = lin(ks[0], ks[1], n_observations, layer1)
    w2, b2 = lin(ks[2], ks[3], layer1, layer2)
    wa, ba = lin(ks[4], ks[5], layer2, 2)     # action_head (2 outputs, as in the module)
    wv, bv = lin(ks[6], ks[7], layer2, 1)     # value_head  (1 output)

    # Pack: fused head weight [layer2, 3], single bias row [1, L1+L2+3].
    w_head = jnp.concatenate([wa, wv], axis=1)
    bias = jnp.concatenate([b1, b2, ba, bv], axis=1)
    return dict(w1=w1, w2=w2, w_head=w_head, bias=bias)


def _reference(x, p):
    """Pure-JAX reference with identical semantics to the PyTorch module."""
    L1 = p["w1"].shape[1]
    L2 = p["w2"].shape[1]
    b1 = p["bias"][:, 0:L1]
    b2 = p["bias"][:, L1:L1 + L2]
    ba = p["bias"][:, L1 + L2:L1 + L2 + 2]
    bv = p["bias"][:, L1 + L2 + 2:L1 + L2 + 3]
    wa = p["w_head"][:, 0:2]
    wv = p["w_head"][:, 2:3]
    h1 = jax.nn.leaky_relu(x @ p["w1"] + b1, 0.01)
    h2 = jax.nn.leaky_relu(h1 @ p["w2"] + b2, 0.01)
    ap = jax.nn.softmax(h2 @ wa + ba, axis=-1)
    sv = h2 @ wv + bv
    return ap, sv


if __name__ == "__main__":
    key = jax.random.PRNGKey(0)
    k_x, k_p, k_x2 = jax.random.split(key, 3)

    B, n_obs = 8, 4                      # small CartPole-like shapes
    x = jax.random.normal(k_x, (B, n_obs), jnp.float32)
    params = init_params(k_p, n_obs)

    # --- small batch (single grid point) ---
    action_prob, state_values = policy_forward(x, params)
    jax.block_until_ready((action_prob, state_values))

    ap_ref, sv_ref = _reference(x, params)
    assert action_prob.shape == (B, 2) and state_values.shape == (B, 1)
    assert jnp.allclose(action_prob, ap_ref, atol=1e-5)
    assert jnp.allclose(state_values, sv_ref, atol=1e-5)
    assert jnp.allclose(jnp.sum(action_prob, axis=-1), 1.0, atol=1e-5)

    # --- rollout-sized batch (exercises the batch grid / resident weights) ---
    B2 = 4096
    x2 = jax.random.normal(k_x2, (B2, n_obs), jnp.float32)
    ap2, sv2 = policy_forward(x2, params)
    jax.block_until_ready((ap2, sv2))
    ap2_ref, sv2_ref = _reference(x2, params)
    assert ap2.shape == (B2, 2) and sv2.shape == (B2, 1)
    assert jnp.allclose(ap2, ap2_ref, atol=1e-5)
    assert jnp.allclose(sv2, sv2_ref, atol=1e-5)
    assert jnp.allclose(jnp.sum(ap2, axis=-1), 1.0, atol=1e-5)

    print("KERNEL_OK")
</pallas_src>

<mosaic_0001>
module attributes {stable_mosaic.version = 11 : i64} {
  func.func @policy_kernel(%arg0: i32, %arg1: memref<8x4xf32, #tpu.memory_space<vmem>>, %arg2: memref<4x32xf32, #tpu.memory_space<vmem>>, %arg3: memref<32x16xf32, #tpu.memory_space<vmem>>, %arg4: memref<16x3xf32, #tpu.memory_space<vmem>>, %arg5: memref<1x51xf32, #tpu.memory_space<vmem>>, %arg6: memref<8x2xf32, #tpu.memory_space<vmem>>, %arg7: memref<8x1xf32, #tpu.memory_space<vmem>>) attributes {dimension_semantics = [#tpu.dimension_semantics<parallel>], iteration_bounds = array<i64: 1>, scalar_prefetch = 0 : i64, scratch_operands = 0 : i64, tpu.core_type = #tpu.core_type<tc>, window_params = [{transform_indices = @transform_0, window_bounds = array<i64: 8, 4>}, {pipeline_mode = #tpu.pipeline_mode<synchronous>, transform_indices = @transform_1, window_bounds = array<i64: 4, 32>}, {pipeline_mode = #tpu.pipeline_mode<synchronous>, transform_indices = @transform_2, window_bounds = array<i64: 32, 16>}, {pipeline_mode = #tpu.pipeline_mode<synchronous>, transform_indices = @transform_3, window_bounds = array<i64: 16, 3>}, {pipeline_mode = #tpu.pipeline_mode<synchronous>, transform_indices = @transform_4, window_bounds = array<i64: 1, 51>}, {transform_indices = @transform_5, window_bounds = array<i64: 8, 2>}, {transform_indices = @transform_6, window_bounds = array<i64: 8, 1>}]} {
    %c0 = arith.constant 0 : index
    %c0_0 = arith.constant 0 : index
    %0 = vector.load %arg1[%c0, %c0_0] : memref<8x4xf32, #tpu.memory_space<vmem>>, vector<8x4xf32>
    %c0_1 = arith.constant 0 : index
    %c0_2 = arith.constant 0 : index
    %1 = vector.load %arg5[%c0_1, %c0_2] : memref<1x51xf32, #tpu.memory_space<vmem>>, vector<1x32xf32>
    %c0_3 = arith.constant 0 : index
    %c32 = arith.constant 32 : index
    %2 = vector.load %arg5[%c0_3, %c32] : memref<1x51xf32, #tpu.memory_space<vmem>>, vector<1x16xf32>
    %c0_4 = arith.constant 0 : index
    %c48 = arith.constant 48 : index
    %3 = vector.load %arg5[%c0_4, %c48] : memref<1x51xf32, #tpu.memory_space<vmem>>, vector<1x3xf32>
    %c0_5 = arith.constant 0 : index
    %c0_6 = arith.constant 0 : index
    %4 = vector.load %arg2[%c0_5, %c0_6] : memref<4x32xf32, #tpu.memory_space<vmem>>, vector<4x32xf32>
    %cst = arith.constant dense<0.000000e+00> : vector<8x32xf32>
    %5 = tpu.matmul %0, %4, %cst {dimension_numbers = #tpu.dot_dimension_numbers<[1], [0], [0], [1], [0, 0, 1, 1], [], []>} : vector<8x4xf32>, vector<4x32xf32>, vector<8x32xf32> -> vector<8x32xf32>
    %6 = vector.broadcast %1 : vector<1x32xf32> to vector<8x32xf32>
    %7 = arith.addf %5, %6 : vector<8x32xf32>
    %cst_7 = arith.constant 0.00999999977 : f32
    %8 = vector.broadcast %cst_7 : f32 to vector<8x32xf32>
    %9 = arith.mulf %8, %7 : vector<8x32xf32>
    %10 = arith.maximumf %7, %9 : vector<8x32xf32>
    %c0_8 = arith.constant 0 : index
    %c0_9 = arith.constant 0 : index
    %11 = vector.load %arg3[%c0_8, %c0_9] : memref<32x16xf32, #tpu.memory_space<vmem>>, vector<32x16xf32>
    %cst_10 = arith.constant dense<0.000000e+00> : vector<8x16xf32>
    %12 = tpu.matmul %10, %11, %cst_10 {dimension_numbers = #tpu.dot_dimension_numbers<[1], [0], [0], [1], [0, 0, 1, 1], [], []>} : vector<8x32xf32>, vector<32x16xf32>, vector<8x16xf32> -> vector<8x16xf32>
    %13 = vector.broadcast %2 : vector<1x16xf32> to vector<8x16xf32>
    %14 = arith.addf %12, %13 : vector<8x16xf32>
    %cst_11 = arith.constant 0.00999999977 : f32
    %15 = vector.broadcast %cst_11 : f32 to vector<8x16xf32>
    %16 = arith.mulf %15, %14 : vector<8x16xf32>
    %17 = arith.maximumf %14, %16 : vector<8x16xf32>
    %c0_12 = arith.constant 0 : index
    %c0_13 = arith.constant 0 : index
    %18 = vector.load %arg4[%c0_12, %c0_13] : memref<16x3xf32, #tpu.memory_space<vmem>>, vector<16x3xf32>
    %cst_14 = arith.constant dense<0.000000e+00> : vector<8x3xf32>
    %19 = tpu.matmul %17, %18, %cst_14 {dimension_numbers = #tpu.dot_dimension_numbers<[1], [0], [0], [1], [0, 0, 1, 1], [], []>} : vector<8x16xf32>, vector<16x3xf32>, vector<8x3xf32> -> vector<8x3xf32>
    %20 = vector.broadcast %3 : vector<1x3xf32> to vector<8x3xf32>
    %21 = arith.addf %19, %20 : vector<8x3xf32>
    %22 = vector.extract_strided_slice %21 {offsets = [0, 1], sizes = [8, 1], strides = [1, 1]} : vector<8x3xf32> to vector<8x1xf32>
    %23 = vector.extract_strided_slice %21 {offsets = [0, 0], sizes = [8, 1], strides = [1, 1]} : vector<8x3xf32> to vector<8x1xf32>
    %24 = arith.subf %22, %23 : vector<8x1xf32>
    %cst_15 = arith.constant 0.000000e+00 : f32
    %25 = vector.broadcast %cst_15 : f32 to vector<8x1xf32>
    %26 = arith.subf %25, %24 : vector<8x1xf32>
    %27 = math.exp %26 : vector<8x1xf32>
    %cst_16 = arith.constant 1.000000e+00 : f32
    %28 = vector.broadcast %cst_16 : f32 to vector<8x1xf32>
    %29 = arith.addf %28, %27 : vector<8x1xf32>
    %cst_17 = arith.constant 1.000000e+00 : f32
    %30 = vector.broadcast %cst_17 : f32 to vector<8x1xf32>
    %31 = arith.divf %30, %29 : vector<8x1xf32>
    %cst_18 = arith.constant 1.000000e+00 : f32
    %32 = vector.broadcast %cst_18 : f32 to vector<8x1xf32>
    %33 = arith.subf %32, %31 : vector<8x1xf32>
    %34 = tpu.concatenate %33, %31 in 1 : vector<8x1xf32>, vector<8x1xf32> -> vector<8x2xf32>
    %c0_19 = arith.constant 0 : index
    %c0_20 = arith.constant 0 : index
    %35 = vector.load %arg6[%c0_19, %c0_20] : memref<8x2xf32, #tpu.memory_space<vmem>>, vector<8x2xf32>
    tpu.vector_store %arg6[%c0_19, %c0_20], %34 {strides = array<i32>} : memref<8x2xf32, #tpu.memory_space<vmem>>, vector<8x2xf32>,
    %36 = vector.extract_strided_slice %21 {offsets = [0, 2], sizes = [8, 1], strides = [1, 1]} : vector<8x3xf32> to vector<8x1xf32>
    %c0_21 = arith.constant 0 : index
    %c0_22 = arith.constant 0 : index
    %37 = vector.load %arg7[%c0_21, %c0_22] : memref<8x1xf32, #tpu.memory_space<vmem>>, vector<8x1xf32>
    tpu.vector_store %arg7[%c0_21, %c0_22], %36 {strides = array<i32>} : memref<8x1xf32, #tpu.memory_space<vmem>>, vector<8x1xf32>,
    return
  }
  func.func @transform_0(%arg0: i32) -> (i32, i32) {
    %c0_i32 = arith.constant 0 : i32
    %c0_i32_0 = arith.constant 0 : i32
    return %arg0, %c0_i32 : i32, i32
  }
  func.func @transform_1(%arg0: i32) -> (i32, i32) {
    %c0_i32 = arith.constant 0 : i32
    %c0_i32_0 = arith.constant 0 : i32
    %c0_i32_1 = arith.constant 0 : i32
    return %c0_i32, %c0_i32_0 : i32, i32
  }
  func.func @transform_2(%arg0: i32) -> (i32, i32) {
    %c0_i32 = arith.constant 0 : i32
    %c0_i32_0 = arith.constant 0 : i32
    %c0_i32_1 = arith.constant 0 : i32
    return %c0_i32, %c0_i32_0 : i32, i32
  }
  func.func @transform_3(%arg0: i32) -> (i32, i32) {
    %c0_i32 = arith.constant 0 : i32
    %c0_i32_0 = arith.constant 0 : i32
    %c0_i32_1 = arith.constant 0 : i32
    return %c0_i32, %c0_i32_0 : i32, i32
  }
  func.func @transform_4(%arg0: i32) -> (i32, i32) {
    %c0_i32 = arith.constant 0 : i32
    %c0_i32_0 = arith.constant 0 : i32
    %c0_i32_1 = arith.constant 0 : i32
    return %c0_i32, %c0_i32_0 : i32, i32
  }
  func.func @transform_5(%arg0: i32) -> (i32, i32) {
    %c0_i32 = arith.constant 0 : i32
    %c0_i32_0 = arith.constant 0 : i32
    return %arg0, %c0_i32 : i32, i32
  }
  func.func @transform_6(%arg0: i32) -> (i32, i32) {
    %c0_i32 = arith.constant 0 : i32
    %c0_i32_0 = arith.constant 0 : i32
    return %arg0, %c0_i32 : i32, i32
  }
}

</mosaic_0001>

<bundles_post_ra>
// kernel: tpu_custom_call.1
= control target key start
LH: loop header
LB: loop body
LE: loop exit
PB: predicated region body
PF: predicated region fallthrough
CT: control target
= control target key end

     0   :  { %vm32_vm0 = vcmask 1043456   ;;  %vm28_vm1 = vcmask 31744   ;;  %s179_s27 = smov 96   ;;  %vm65_vm2 = vcmask 261120   ;;  %vm96_vm3 = vcmask 130048   ;;  %s182_s14 = smov 1   ;;  %s254_s1 = inlined_call_operand.vmem [shape: f32[4,32], index: 1, kind: input, shape index: {}]   ;;  %s255_s0 = inlined_call_operand.vmem [shape: f32[8,4], index: 0, kind: input, shape index: {}]   ;;  %s256_s4 = inlined_call_operand.vmem [shape: f32[1,51], index: 4, kind: input, shape index: {}]   ;;  %s257_s2 = inlined_call_operand.vmem [shape: f32[32,16], index: 2, kind: input, shape index: {}]   ;;  %s258_s3 = inlined_call_operand.vmem [shape: f32[16,3], index: 3, kind: input, shape index: {}]   ;;  %s259_s6 = inlined_call_operand.vmem [shape: f32[8,1], index: 6, kind: output, shape index: {1}]   ;;  %s260_s5 = inlined_call_operand.vmem [shape: f32[8,2], index: 5, kind: output, shape index: {0}]  }
   0x1   :  { %v24_v0 = vld [vmem:[%s254_s1] sm:$0xf]  ;;  %v61_v3 = vld [vmem:[%s257_s2 + $0x18] sm:$0xff]  ;;  %v60_v4 = vld [vmem:[%s257_s2 + $0x10] sm:$0xff]  ;;  %vm149_vm4 = vcmask 7168   ;;  %vm151_vm9 = vcmask 15360  }
   0x2   :  { %v22_v1 = vld [vmem:[%s255_s0] sm:$0xff]  ;;  %165 = vmatpush.msk.msra.mxu0 %vm32_vm0, %v24_v0  ;;  %81 = vmatpush.msra.mxu1 %v61_v3  ;;  %v59_v5 = vld [vmem:[%s257_s2 + $0x8] sm:$0xff] }
   0x3   :  { %166 = vmatmul.msk.f32.vlgmr.msra.gmra.mxu0 %vm28_vm1, %v22_v1  ;;  %v174_v2 = vld [vmem:[%s256_s4] ss:$0 sm:$0xff]  ;;  %s180_s4 = smov 80   ;;  %v92_v11 = vld [vmem:[%s258_s3 + $0x8] sm:$0xff] }
   0x4   :  { %62 = vrot.lane.b32.xlu0 %v174_v2, %s179_s27  ;;  %82 = vmatpush.msra.mxu1 %v60_v4  ;;  %v58_v6 = vld [vmem:[%s257_s2] sm:$0xff]  ;;  %s181_s2 = smov 126  }
   0x5   :  { %114 = vmatpush.msra.mxu2 %v92_v11  ;;  %v91_v12 = vld [vmem:[%s258_s3] sm:$0xff] }
   0x6   :  { %83 = vmatpush.msra.mxu1 %v59_v5 }
   0x7   :  { %115 = vmatpush.msra.mxu2 %v91_v12 }
   0x8   :  { %84 = vmatpush.msra.mxu1 %v58_v6 }
   0xc   :  { %93 = vrot.lane.b32.xlu0 %v174_v2, %s180_s4 }
  0x76   :  { %v63_v13 = vpop.permute.xlu0 %62 }
  0x7e   :  { %v94_v18 = vpop.permute.xlu0 %93 }
  0x80   :  { %v53_v7 = vpop.f32.mrf.mxu0 }
  0x81   :  { %v54_v8 = vadd.f32 %v174_v2, %v53_v7 }
  0x83   :  { %v56_v9 = vmul.f32 0.01, %v54_v8 }
  0x85   :  { %v57_v10 = vmax.f32 %v54_v8, %v56_v9 }
  0x87   :  { %167 = vmatmul.msk.f32.vlgmr.msra.gmra.mxu1 %vm65_vm2, %v57_v10 }
 0x104   :  { %v86_v14 = vpop.f32.mrf.mxu1 }
 0x105   :  { %v87_v15 = vadd.f32 %v86_v14, %v63_v13 }
 0x107   :  { %v89_v16 = vmul.f32 0.01, %v87_v15 }
 0x109   :  { %v90_v17 = vmax.f32 %v87_v15, %v89_v16 }
 0x10b   :  { %168 = vmatmul.msk.f32.vlgmr.msra.gmra.mxu2 %vm96_vm3, %v90_v17 }
 0x18e   :  { %v117_v19 = vpop.f32.mrf.mxu2 }
 0x18f   :  { %v118_v20 = vadd.f32 %v117_v19, %v94_v18 }
 0x191   :  { %153 = vrot.lane.b32.xlu2 %v118_v20, %s181_s2  ;;  %121 = vrot.lane.b32.xlu1 %v118_v20, %s182_s14 }
 0x1eb   :  { %v154_v21 = vpop.permute.xlu2 %153 }
 0x1ec   :  { %156 = vst.msk [vmem:[%s259_s6] sm:$0xff] %vm149_vm4, %v154_v21  ;;  %s183_s6 = smov 127  }
 0x203   :  { %v122_v22 = vpop.permute.xlu1 %121 }
 0x204   :  { %v124_v23 = vsub.f32 %v118_v20, %v122_v22 }
 0x206   :  { %v125_v24 = vsub.f32 0.0, %v124_v23 }
 0x208   :  { %v126_v25 = vmul.f32 1.442695, %v125_v24 }
 0x20a   :  { %175 = vpow2.f32 %v126_v25 }
 0x210   :  { %v176_v26 = vpop.eup %175 }
 0x211   :  { %v128_v27 = vadd.f32 1.0, %v176_v26 }
 0x213   :  { %177 = vrcp.f32 %v128_v27  ;;  %v140_v31 = vand.u32 2147483648, %v128_v27  ;;  %v138_v33 = vand.u32 2147483647, %v128_v27  ;;  %vm134_vm6 = vweird.f32 %v128_v27 }
 0x215   :  { %v141_v35 = vor.u32 1.1754944e-38, %v140_v31  ;;  %vm139_vm8 = vcmp.eq.f32.partialorder %v138_v33, 8.507059e+37 }
 0x219   :  { %v178_v28 = vpop.eup %177 }
 0x21a   :  { %v130_v29 = vmul.f32 %v178_v28, %v128_v27  ;;  %vm135_vm5 = vweird.f32 %v178_v28 }
 0x21b   :  { %vm136_vm7 = vmor %vm134_vm6, %vm135_vm5 }
 0x21c   :  { %v131_v30 = vsub.f32 1.0, %v130_v29 }
 0x21e   :  { %v132_v32 = vmul.f32 %v178_v28, %v131_v30 }
 0x220   :  { %v133_v34 = vadd.f32 %v178_v28, %v132_v32 }
 0x222   :  { %v137_v36 = vsel %vm136_vm7, %v178_v28, %v133_v34 }
 0x223   :  { %v142_v37 = vsel %vm139_vm8, %v141_v35, %v137_v36 }
 0x224   :  { %v144_v38 = vsub.f32 1.0, %v142_v37 }
 0x226   :  { %146 = vrot.lane.b32.xlu1 %v144_v38, %s183_s6 }
 0x298   :  { %v147_v39 = vpop.permute.xlu1 %146 }
 0x299   :  { %v150_v40 = vsel %vm149_vm4, %v147_v39, %v142_v37 }
 0x29a   :  { %152 = vst.msk [vmem:[%s260_s5] sm:$0xff] %vm151_vm9, %v150_v40 }

</bundles_post_ra>
